<compile_context>
chip_gen: v7x
topology: tpu7x:2x2x1
jax: 0.10.0
libtpu: 0.0.40
codegen_flags: <defaults>
</compile_context>

<pallas_src>
import math
import jax
import jax.numpy as jnp
from jax import lax
from jax.experimental import pallas as pl
from jax.experimental.pallas import tpu as pltpu

# --- model dims (small, consistent with the module) ---
BATCH = 2
SEQ = 8
D_MODEL = 32
N_HEADS = 4
D_FF = 64
EPS = 1e-6
D_K = D_MODEL // N_HEADS
BS = BATCH * SEQ               # folded (batch*seq) row axis
SV_ROWS = 8 + BS               # small-param slab: 6 vector rows (+2 pad) + BS mask rows


def _fast_recip(d):
    """EUP approximate reciprocal + one Newton step (~full f32 accuracy)."""
    r = pl.reciprocal(d, approx=True)
    return r * (2.0 - d * r)


def _layernorm(x, alpha, bias):
    """Matches the PyTorch module: unbiased (ddof=1) std, eps added to std."""
    n = x.shape[-1]
    mean = jnp.mean(x, axis=-1, keepdims=True)
    c = x - mean
    var = jnp.sum(c * c, axis=-1, keepdims=True) * (1.0 / (n - 1))
    inv = _fast_recip(jnp.sqrt(var) + EPS)
    return alpha * c * inv + bias


def _gelu_exact(x):
    return 0.5 * x * (1.0 + lax.erf(x * (1.0 / math.sqrt(2.0))))


def decoder_block_kernel(x_ref, sv_ref, w_ref, w2_ref, o_ref):
    x = x_ref[...]                               # (BS, D)
    sv = sv_ref[...]                             # (SV_ROWS, 128) small-param slab
    w = w_ref[...]                               # (D, 192) = [wqkv | wo | w1]
    w2 = w2_ref[...]                             # (D_FF, D)

    ln1_a = sv[0, :D_MODEL]
    ln1_b = sv[1, :D_MODEL]
    ln2_a = sv[2, :D_MODEL]
    ln2_b = sv[3, :D_MODEL]
    b1 = sv[4, :D_FF]
    b2 = sv[5, :D_MODEL]
    amask = sv[8:8 + BS, :BS]                    # (BS, BS) additive: 0 / -1e9

    wqkv = w[:, 0:3 * D_MODEL]                   # (D, 3D)  (1/sqrt(d_k) folded into Q cols)
    wo = w[:, 3 * D_MODEL:4 * D_MODEL]           # (D, D)
    w1 = w[:, 4 * D_MODEL:4 * D_MODEL + D_FF]    # (D, D_FF)

    # ----- residual 0: x + SelfAttention(LN1(x)) -----
    xn = _layernorm(x, ln1_a, ln1_b)                                   # (BS, D)
    qkv = jnp.dot(xn, wqkv, preferred_element_type=jnp.float32)        # (BS, 3D) one matmul

    # Head split via lane slices (head h occupies contiguous D_K columns).
    q_h = jnp.stack([qkv[:, h * D_K:(h + 1) * D_K]
                     for h in range(N_HEADS)], axis=0)                 # (H, BS, DK)
    k_h = jnp.stack([qkv[:, D_MODEL + h * D_K:D_MODEL + (h + 1) * D_K]
                     for h in range(N_HEADS)], axis=0)
    v_h = jnp.stack([qkv[:, 2 * D_MODEL + h * D_K:2 * D_MODEL + (h + 1) * D_K]
                     for h in range(N_HEADS)], axis=0)

    scores = jnp.einsum('hqd,hkd->hqk', q_h, k_h,
                        preferred_element_type=jnp.float32)            # (H, BS, BS)
    scores = scores + amask[None]                                      # block-diag causal mask
    scores = scores - jnp.max(scores, axis=-1, keepdims=True)
    p = jnp.exp(scores)
    p = p * _fast_recip(jnp.sum(p, axis=-1, keepdims=True))
    ctx = jnp.einsum('hqk,hkd->hqd', p, v_h,
                     preferred_element_type=jnp.float32)               # (H, BS, DK)

    # Merge heads along lanes, then ONE output projection with the real wo.
    ctx_flat = jnp.concatenate([ctx[h] for h in range(N_HEADS)], axis=-1)  # (BS, D)
    attn = jnp.dot(ctx_flat, wo, preferred_element_type=jnp.float32)
    x1 = x + attn                                 # dropout = identity (eval)

    # ----- residual 1: x1 + FFN(LN2(x1)) -----
    xn2 = _layernorm(x1, ln2_a, ln2_b)
    h1 = jnp.dot(xn2, w1, preferred_element_type=jnp.float32) + b1
    h1 = _gelu_exact(h1)
    h2 = jnp.dot(h1, w2, preferred_element_type=jnp.float32) + b2
    o_ref[...] = (x1 + h2).astype(o_ref.dtype)


def pack_params(mask, params):
    """One-time (parameter-only) packing; hoisted out of the per-call path."""
    scale = 1.0 / math.sqrt(D_K)
    wqkv = jnp.concatenate([params["wq"] * scale, params["wk"], params["wv"]],
                           axis=1)                                     # (D, 3D)
    w_slab = jnp.concatenate([wqkv, params["wo"], params["w1"]],
                             axis=1).astype(jnp.float32)               # (D, 192)

    sv = jnp.zeros((SV_ROWS, 128), jnp.float32)
    sv = sv.at[0, :D_MODEL].set(params["ln1_a"].reshape(-1))
    sv = sv.at[1, :D_MODEL].set(params["ln1_b"].reshape(-1))
    sv = sv.at[2, :D_MODEL].set(params["ln2_a"].reshape(-1))
    sv = sv.at[3, :D_MODEL].set(params["ln2_b"].reshape(-1))
    sv = sv.at[4, :D_FF].set(params["b1"].reshape(-1))
    sv = sv.at[5, :D_MODEL].set(params["b2"].reshape(-1))

    # Block-diagonal causal additive mask over the folded (batch*seq) axis:
    # row i may attend to col j iff same batch entry AND mask[i%S, j%S] != 0.
    allow = jnp.kron(jnp.eye(BATCH, dtype=jnp.float32),
                     (mask != 0).astype(jnp.float32))                  # (BS, BS)
    amask = jnp.where(allow > 0, jnp.float32(0.0), jnp.float32(-1e9))
    sv = sv.at[8:8 + BS, :BS].set(amask)

    return sv, w_slab, params["w2"].astype(jnp.float32)


def decoder_block(x, packed):
    sv, w_slab, w2 = packed
    x_flat = x.reshape(BS, D_MODEL)               # free leading-dim reshape
    vmem = pl.BlockSpec(memory_space=pltpu.MemorySpace.VMEM)
    out = pl.pallas_call(
        decoder_block_kernel,
        out_shape=jax.ShapeDtypeStruct((BS, D_MODEL), x.dtype),
        in_specs=[vmem] * 4,
        out_specs=vmem,
    )(x_flat, sv, w_slab, w2)
    # TODO(synk): for larger batch/seq, add a leading ("parallel",) grid axis so
    # v7x's second TensorCore is used; at B=2,S=8 a grid would be pure overhead.
    return out.reshape(BATCH, SEQ, D_MODEL)


def reference(x, mask, p):
    """Pure-JAX reference of the PyTorch forward (dropout = identity)."""
    def ln(z, a, b):
        mean = jnp.mean(z, axis=-1, keepdims=True)
        var = jnp.sum((z - mean) ** 2, axis=-1, keepdims=True) / (z.shape[-1] - 1)
        return a * (z - mean) / (jnp.sqrt(var) + EPS) + b

    xn = ln(x, p["ln1_a"], p["ln1_b"])
    q = xn @ p["wq"]; k = xn @ p["wk"]; v = xn @ p["wv"]
    B, S, D = x.shape

    def split(t):  # (B,S,D) -> (B,H,S,dk)
        return t.reshape(B, S, N_HEADS, D_K).transpose(0, 2, 1, 3)

    qh, kh, vh = split(q), split(k), split(v)
    scores = jnp.einsum("bhqd,bhkd->bhqk", qh, kh) / math.sqrt(D_K)
    scores = jnp.where(mask[None, None] == 0, -1e9, scores)
    attn = jax.nn.softmax(scores, axis=-1)
    o = jnp.einsum("bhqk,bhkd->bhqd", attn, vh)
    o = o.transpose(0, 2, 1, 3).reshape(B, S, D) @ p["wo"]
    x1 = x + o

    xn2 = ln(x1, p["ln2_a"], p["ln2_b"])
    z = xn2 @ p["w1"] + p["b1"]
    h1 = 0.5 * z * (1.0 + lax.erf(z / math.sqrt(2.0)))
    return x1 + (h1 @ p["w2"] + p["b2"])


if __name__ == "__main__":
    key = jax.random.PRNGKey(0)
    ks = jax.random.split(key, 10)

    x = jax.random.normal(ks[0], (BATCH, SEQ, D_MODEL), dtype=jnp.float32)
    # causal mask (1 = attend, 0 = masked)
    mask = jnp.tril(jnp.ones((SEQ, SEQ), dtype=jnp.int32))

    std = 0.02
    params = {
        "wq": jax.random.normal(ks[1], (D_MODEL, D_MODEL), jnp.float32) * std,
        "wk": jax.random.normal(ks[2], (D_MODEL, D_MODEL), jnp.float32) * std,
        "wv": jax.random.normal(ks[3], (D_MODEL, D_MODEL), jnp.float32) * std,
        "wo": jax.random.normal(ks[4], (D_MODEL, D_MODEL), jnp.float32) * std,
        "ln1_a": jnp.ones((1, D_MODEL), jnp.float32),
        "ln1_b": jnp.zeros((1, D_MODEL), jnp.float32),
        "ln2_a": jnp.ones((1, D_MODEL), jnp.float32),
        "ln2_b": jnp.zeros((1, D_MODEL), jnp.float32),
        "w1": jax.random.normal(ks[5], (D_MODEL, D_FF), jnp.float32) * std,
        "b1": jax.random.normal(ks[6], (1, D_FF), jnp.float32) * std,
        "w2": jax.random.normal(ks[7], (D_FF, D_MODEL), jnp.float32) * std,
        "b2": jax.random.normal(ks[8], (1, D_MODEL), jnp.float32) * std,
    }

    # Parameter packing done ONCE (not on the per-call path).
    packed = jax.tree_util.tree_map(jax.block_until_ready, pack_params(mask, params))

    out = decoder_block(x, packed)
    out = jax.block_until_ready(out)

    ref = reference(x, mask, params)
    assert out.shape == (BATCH, SEQ, D_MODEL)
    assert jnp.max(jnp.abs(out - ref)) < 1e-4, "mismatch vs pure-JAX reference"

    print("KERNEL_OK")
</pallas_src>

<mosaic_0001>
module attributes {stable_mosaic.version = 11 : i64} {
  func.func @decoder_block_kernel(%arg0: memref<16x32xf32, #tpu.memory_space<vmem>>, %arg1: memref<24x128xf32, #tpu.memory_space<vmem>>, %arg2: memref<32x192xf32, #tpu.memory_space<vmem>>, %arg3: memref<64x32xf32, #tpu.memory_space<vmem>>, %arg4: memref<16x32xf32, #tpu.memory_space<vmem>>) attributes {dimension_semantics = [], scalar_prefetch = 0 : i64, scratch_operands = 0 : i64, tpu.core_type = #tpu.core_type<tc>} {
    %c0 = arith.constant 0 : index
    %c0_0 = arith.constant 0 : index
    %0 = vector.load %arg0[%c0, %c0_0] : memref<16x32xf32, #tpu.memory_space<vmem>>, vector<16x32xf32>
    %c0_1 = arith.constant 0 : index
    %c0_2 = arith.constant 0 : index
    %1 = vector.load %arg1[%c0_1, %c0_2] : memref<24x128xf32, #tpu.memory_space<vmem>>, vector<24x128xf32>
    %c0_3 = arith.constant 0 : index
    %c0_4 = arith.constant 0 : index
    %2 = vector.load %arg2[%c0_3, %c0_4] : memref<32x192xf32, #tpu.memory_space<vmem>>, vector<32x192xf32>
    %c0_5 = arith.constant 0 : index
    %c0_6 = arith.constant 0 : index
    %3 = vector.load %arg3[%c0_5, %c0_6] : memref<64x32xf32, #tpu.memory_space<vmem>>, vector<64x32xf32>
    %4 = vector.extract_strided_slice %1 {offsets = [0, 0], sizes = [1, 32], strides = [1, 1]} : vector<24x128xf32> to vector<1x32xf32>
    %5 = vector.shape_cast %4 : vector<1x32xf32> to vector<32xf32>
    %6 = vector.extract_strided_slice %1 {offsets = [1, 0], sizes = [1, 32], strides = [1, 1]} : vector<24x128xf32> to vector<1x32xf32>
    %7 = vector.shape_cast %6 : vector<1x32xf32> to vector<32xf32>
    %8 = vector.extract_strided_slice %1 {offsets = [2, 0], sizes = [1, 32], strides = [1, 1]} : vector<24x128xf32> to vector<1x32xf32>
    %9 = vector.shape_cast %8 : vector<1x32xf32> to vector<32xf32>
    %10 = vector.extract_strided_slice %1 {offsets = [3, 0], sizes = [1, 32], strides = [1, 1]} : vector<24x128xf32> to vector<1x32xf32>
    %11 = vector.shape_cast %10 : vector<1x32xf32> to vector<32xf32>
    %12 = vector.extract_strided_slice %1 {offsets = [4, 0], sizes = [1, 64], strides = [1, 1]} : vector<24x128xf32> to vector<1x64xf32>
    %13 = vector.shape_cast %12 : vector<1x64xf32> to vector<64xf32>
    %14 = vector.extract_strided_slice %1 {offsets = [5, 0], sizes = [1, 32], strides = [1, 1]} : vector<24x128xf32> to vector<1x32xf32>
    %15 = vector.shape_cast %14 : vector<1x32xf32> to vector<32xf32>
    %16 = vector.extract_strided_slice %1 {offsets = [8, 0], sizes = [16, 16], strides = [1, 1]} : vector<24x128xf32> to vector<16x16xf32>
    %17 = vector.extract_strided_slice %2 {offsets = [0, 0], sizes = [32, 96], strides = [1, 1]} : vector<32x192xf32> to vector<32x96xf32>
    %18 = vector.extract_strided_slice %2 {offsets = [0, 96], sizes = [32, 32], strides = [1, 1]} : vector<32x192xf32> to vector<32x32xf32>
    %19 = vector.extract_strided_slice %2 {offsets = [0, 128], sizes = [32, 64], strides = [1, 1]} : vector<32x192xf32> to vector<32x64xf32>
    %cst = arith.constant dense<0.000000e+00> : vector<16xf32>
    %20 = vector.multi_reduction <add>, %0, %cst [1] : vector<16x32xf32> to vector<16xf32>
    %21 = vector.shape_cast %20 : vector<16xf32> to vector<16x1xf32>
    %cst_7 = arith.constant 3.200000e+01 : f32
    %22 = vector.broadcast %cst_7 : f32 to vector<16x1xf32>
    %23 = arith.divf %21, %22 : vector<16x1xf32>
    %24 = vector.broadcast %23 : vector<16x1xf32> to vector<16x32xf32>
    %25 = arith.subf %0, %24 : vector<16x32xf32>
    %26 = arith.mulf %25, %25 : vector<16x32xf32>
    %cst_8 = arith.constant dense<0.000000e+00> : vector<16xf32>
    %27 = vector.multi_reduction <add>, %26, %cst_8 [1] : vector<16x32xf32> to vector<16xf32>
    %28 = vector.shape_cast %27 : vector<16xf32> to vector<16x1xf32>
    %cst_9 = arith.constant 0.0322580636 : f32
    %29 = vector.broadcast %cst_9 : f32 to vector<16x1xf32>
    %30 = arith.mulf %28, %29 : vector<16x1xf32>
    %31 = math.sqrt %30 : vector<16x1xf32>
    %cst_10 = arith.constant 9.99999997E-7 : f32
    %32 = vector.broadcast %cst_10 : f32 to vector<16x1xf32>
    %33 = arith.addf %31, %32 : vector<16x1xf32>
    %34 = tpu.reciprocal %33 {approx = true} : vector<16x1xf32> -> vector<16x1xf32>
    %35 = arith.mulf %33, %34 : vector<16x1xf32>
    %cst_11 = arith.constant 2.000000e+00 : f32
    %36 = vector.broadcast %cst_11 : f32 to vector<16x1xf32>
    %37 = arith.subf %36, %35 : vector<16x1xf32>
    %38 = arith.mulf %34, %37 : vector<16x1xf32>
    %39 = vector.shape_cast %5 : vector<32xf32> to vector<1x32xf32>
    %40 = vector.broadcast %39 : vector<1x32xf32> to vector<16x32xf32>
    %41 = arith.mulf %40, %25 : vector<16x32xf32>
    %42 = vector.broadcast %38 : vector<16x1xf32> to vector<16x32xf32>
    %43 = arith.mulf %41, %42 : vector<16x32xf32>
    %44 = vector.shape_cast %7 : vector<32xf32> to vector<1x32xf32>
    %45 = vector.broadcast %44 : vector<1x32xf32> to vector<16x32xf32>
    %46 = arith.addf %43, %45 : vector<16x32xf32>
    %cst_12 = arith.constant dense<0.000000e+00> : vector<16x96xf32>
    %47 = tpu.matmul %46, %17, %cst_12 {dimension_numbers = #tpu.dot_dimension_numbers<[1], [0], [0], [1], [0, 0, 1, 1], [], []>} : vector<16x32xf32>, vector<32x96xf32>, vector<16x96xf32> -> vector<16x96xf32>
    %48 = vector.extract_strided_slice %47 {offsets = [0, 0], sizes = [16, 8], strides = [1, 1]} : vector<16x96xf32> to vector<16x8xf32>
    %49 = vector.extract_strided_slice %47 {offsets = [0, 8], sizes = [16, 8], strides = [1, 1]} : vector<16x96xf32> to vector<16x8xf32>
    %50 = vector.extract_strided_slice %47 {offsets = [0, 16], sizes = [16, 8], strides = [1, 1]} : vector<16x96xf32> to vector<16x8xf32>
    %51 = vector.extract_strided_slice %47 {offsets = [0, 24], sizes = [16, 8], strides = [1, 1]} : vector<16x96xf32> to vector<16x8xf32>
    %52 = vector.shape_cast %48 : vector<16x8xf32> to vector<1x16x8xf32>
    %53 = vector.shape_cast %49 : vector<16x8xf32> to vector<1x16x8xf32>
    %54 = vector.shape_cast %50 : vector<16x8xf32> to vector<1x16x8xf32>
    %55 = vector.shape_cast %51 : vector<16x8xf32> to vector<1x16x8xf32>
    %56 = tpu.concatenate %52, %53, %54, %55 in 0 : vector<1x16x8xf32>, vector<1x16x8xf32>, vector<1x16x8xf32>, vector<1x16x8xf32> -> vector<4x16x8xf32>
    %57 = vector.extract_strided_slice %47 {offsets = [0, 32], sizes = [16, 8], strides = [1, 1]} : vector<16x96xf32> to vector<16x8xf32>
    %58 = vector.extract_strided_slice %47 {offsets = [0, 40], sizes = [16, 8], strides = [1, 1]} : vector<16x96xf32> to vector<16x8xf32>
    %59 = vector.extract_strided_slice %47 {offsets = [0, 48], sizes = [16, 8], strides = [1, 1]} : vector<16x96xf32> to vector<16x8xf32>
    %60 = vector.extract_strided_slice %47 {offsets = [0, 56], sizes = [16, 8], strides = [1, 1]} : vector<16x96xf32> to vector<16x8xf32>
    %61 = vector.shape_cast %57 : vector<16x8xf32> to vector<1x16x8xf32>
    %62 = vector.shape_cast %58 : vector<16x8xf32> to vector<1x16x8xf32>
    %63 = vector.shape_cast %59 : vector<16x8xf32> to vector<1x16x8xf32>
    %64 = vector.shape_cast %60 : vector<16x8xf32> to vector<1x16x8xf32>
    %65 = tpu.concatenate %61, %62, %63, %64 in 0 : vector<1x16x8xf32>, vector<1x16x8xf32>, vector<1x16x8xf32>, vector<1x16x8xf32> -> vector<4x16x8xf32>
    %66 = vector.extract_strided_slice %47 {offsets = [0, 64], sizes = [16, 8], strides = [1, 1]} : vector<16x96xf32> to vector<16x8xf32>
    %67 = vector.extract_strided_slice %47 {offsets = [0, 72], sizes = [16, 8], strides = [1, 1]} : vector<16x96xf32> to vector<16x8xf32>
    %68 = vector.extract_strided_slice %47 {offsets = [0, 80], sizes = [16, 8], strides = [1, 1]} : vector<16x96xf32> to vector<16x8xf32>
    %69 = vector.extract_strided_slice %47 {offsets = [0, 88], sizes = [16, 8], strides = [1, 1]} : vector<16x96xf32> to vector<16x8xf32>
    %70 = vector.shape_cast %66 : vector<16x8xf32> to vector<1x16x8xf32>
    %71 = vector.shape_cast %67 : vector<16x8xf32> to vector<1x16x8xf32>
    %72 = vector.shape_cast %68 : vector<16x8xf32> to vector<1x16x8xf32>
    %73 = vector.shape_cast %69 : vector<16x8xf32> to vector<1x16x8xf32>
    %74 = tpu.concatenate %70, %71, %72, %73 in 0 : vector<1x16x8xf32>, vector<1x16x8xf32>, vector<1x16x8xf32>, vector<1x16x8xf32> -> vector<4x16x8xf32>
    "tpu.trace_start"() <{level = 10 : i32, message = "hqd,hkd->hqk"}> : () -> ()
    %cst_13 = arith.constant dense<0.000000e+00> : vector<4x16x16xf32>
    %75 = tpu.matmul %56, %65, %cst_13 {dimension_numbers = #tpu.dot_dimension_numbers<[2], [2], [1], [1], [0, 0, 0, 1, 1, 1], [0], [0]>} : vector<4x16x8xf32>, vector<4x16x8xf32>, vector<4x16x16xf32> -> vector<4x16x16xf32>
    "tpu.trace_stop"() : () -> ()
    %76 = vector.shape_cast %16 : vector<16x16xf32> to vector<1x16x16xf32>
    %77 = vector.broadcast %76 : vector<1x16x16xf32> to vector<4x16x16xf32>
    %78 = arith.addf %75, %77 : vector<4x16x16xf32>
    %cst_14 = arith.constant dense<0xFF800000> : vector<4x16xf32>
    %79 = vector.multi_reduction <maximumf>, %78, %cst_14 [2] : vector<4x16x16xf32> to vector<4x16xf32>
    %80 = vector.shape_cast %79 : vector<4x16xf32> to vector<4x16x1xf32>
    %81 = vector.broadcast %80 : vector<4x16x1xf32> to vector<4x16x16xf32>
    %82 = arith.subf %78, %81 : vector<4x16x16xf32>
    %83 = math.exp %82 : vector<4x16x16xf32>
    %cst_15 = arith.constant dense<0.000000e+00> : vector<4x16xf32>
    %84 = vector.multi_reduction <add>, %83, %cst_15 [2] : vector<4x16x16xf32> to vector<4x16xf32>
    %85 = vector.shape_cast %84 : vector<4x16xf32> to vector<4x16x1xf32>
    %86 = tpu.reciprocal %85 {approx = true} : vector<4x16x1xf32> -> vector<4x16x1xf32>
    %87 = arith.mulf %85, %86 : vector<4x16x1xf32>
    %cst_16 = arith.constant 2.000000e+00 : f32
    %88 = vector.broadcast %cst_16 : f32 to vector<4x16x1xf32>
    %89 = arith.subf %88, %87 : vector<4x16x1xf32>
    %90 = arith.mulf %86, %89 : vector<4x16x1xf32>
    %91 = vector.broadcast %90 : vector<4x16x1xf32> to vector<4x16x16xf32>
    %92 = arith.mulf %83, %91 : vector<4x16x16xf32>
    "tpu.trace_start"() <{level = 10 : i32, message = "hqk,hkd->hqd"}> : () -> ()
    %cst_17 = arith.constant dense<0.000000e+00> : vector<4x16x8xf32>
    %93 = tpu.matmul %92, %74, %cst_17 {dimension_numbers = #tpu.dot_dimension_numbers<[2], [1], [1], [2], [0, 0, 0, 1, 1, 2], [0], [0]>} : vector<4x16x16xf32>, vector<4x16x8xf32>, vector<4x16x8xf32> -> vector<4x16x8xf32>
    "tpu.trace_stop"() : () -> ()
    %94 = vector.extract_strided_slice %93 {offsets = [0, 0, 0], sizes = [1, 16, 8], strides = [1, 1, 1]} : vector<4x16x8xf32> to vector<1x16x8xf32>
    %95 = vector.shape_cast %94 : vector<1x16x8xf32> to vector<16x8xf32>
    %96 = vector.extract_strided_slice %93 {offsets = [1, 0, 0], sizes = [1, 16, 8], strides = [1, 1, 1]} : vector<4x16x8xf32> to vector<1x16x8xf32>
    %97 = vector.shape_cast %96 : vector<1x16x8xf32> to vector<16x8xf32>
    %98 = vector.extract_strided_slice %93 {offsets = [2, 0, 0], sizes = [1, 16, 8], strides = [1, 1, 1]} : vector<4x16x8xf32> to vector<1x16x8xf32>
    %99 = vector.shape_cast %98 : vector<1x16x8xf32> to vector<16x8xf32>
    %100 = vector.extract_strided_slice %93 {offsets = [3, 0, 0], sizes = [1, 16, 8], strides = [1, 1, 1]} : vector<4x16x8xf32> to vector<1x16x8xf32>
    %101 = vector.shape_cast %100 : vector<1x16x8xf32> to vector<16x8xf32>
    %102 = tpu.concatenate %95, %97, %99, %101 in 1 : vector<16x8xf32>, vector<16x8xf32>, vector<16x8xf32>, vector<16x8xf32> -> vector<16x32xf32>
    %cst_18 = arith.constant dense<0.000000e+00> : vector<16x32xf32>
    %103 = tpu.matmul %102, %18, %cst_18 {dimension_numbers = #tpu.dot_dimension_numbers<[1], [0], [0], [1], [0, 0, 1, 1], [], []>} : vector<16x32xf32>, vector<32x32xf32>, vector<16x32xf32> -> vector<16x32xf32>
    %104 = arith.addf %0, %103 : vector<16x32xf32>
    %cst_19 = arith.constant dense<0.000000e+00> : vector<16xf32>
    %105 = vector.multi_reduction <add>, %104, %cst_19 [1] : vector<16x32xf32> to vector<16xf32>
    %106 = vector.shape_cast %105 : vector<16xf32> to vector<16x1xf32>
    %cst_20 = arith.constant 3.200000e+01 : f32
    %107 = vector.broadcast %cst_20 : f32 to vector<16x1xf32>
    %108 = arith.divf %106, %107 : vector<16x1xf32>
    %109 = vector.broadcast %108 : vector<16x1xf32> to vector<16x32xf32>
    %110 = arith.subf %104, %109 : vector<16x32xf32>
    %111 = arith.mulf %110, %110 : vector<16x32xf32>
    %cst_21 = arith.constant dense<0.000000e+00> : vector<16xf32>
    %112 = vector.multi_reduction <add>, %111, %cst_21 [1] : vector<16x32xf32> to vector<16xf32>
    %113 = vector.shape_cast %112 : vector<16xf32> to vector<16x1xf32>
    %cst_22 = arith.constant 0.0322580636 : f32
    %114 = vector.broadcast %cst_22 : f32 to vector<16x1xf32>
    %115 = arith.mulf %113, %114 : vector<16x1xf32>
    %116 = math.sqrt %115 : vector<16x1xf32>
    %cst_23 = arith.constant 9.99999997E-7 : f32
    %117 = vector.broadcast %cst_23 : f32 to vector<16x1xf32>
    %118 = arith.addf %116, %117 : vector<16x1xf32>
    %119 = tpu.reciprocal %118 {approx = true} : vector<16x1xf32> -> vector<16x1xf32>
    %120 = arith.mulf %118, %119 : vector<16x1xf32>
    %cst_24 = arith.constant 2.000000e+00 : f32
    %121 = vector.broadcast %cst_24 : f32 to vector<16x1xf32>
    %122 = arith.subf %121, %120 : vector<16x1xf32>
    %123 = arith.mulf %119, %122 : vector<16x1xf32>
    %124 = vector.shape_cast %9 : vector<32xf32> to vector<1x32xf32>
    %125 = vector.broadcast %124 : vector<1x32xf32> to vector<16x32xf32>
    %126 = arith.mulf %125, %110 : vector<16x32xf32>
    %127 = vector.broadcast %123 : vector<16x1xf32> to vector<16x32xf32>
    %128 = arith.mulf %126, %127 : vector<16x32xf32>
    %129 = vector.shape_cast %11 : vector<32xf32> to vector<1x32xf32>
    %130 = vector.broadcast %129 : vector<1x32xf32> to vector<16x32xf32>
    %131 = arith.addf %128, %130 : vector<16x32xf32>
    %cst_25 = arith.constant dense<0.000000e+00> : vector<16x64xf32>
    %132 = tpu.matmul %131, %19, %cst_25 {dimension_numbers = #tpu.dot_dimension_numbers<[1], [0], [0], [1], [0, 0, 1, 1], [], []>} : vector<16x32xf32>, vector<32x64xf32>, vector<16x64xf32> -> vector<16x64xf32>
    %133 = vector.shape_cast %13 : vector<64xf32> to vector<1x64xf32>
    %134 = vector.broadcast %133 : vector<1x64xf32> to vector<16x64xf32>
    %135 = arith.addf %132, %134 : vector<16x64xf32>
    %cst_26 = arith.constant 5.000000e-01 : f32
    %136 = vector.broadcast %cst_26 : f32 to vector<16x64xf32>
    %137 = arith.mulf %136, %135 : vector<16x64xf32>
    %cst_27 = arith.constant 0.707106769 : f32
    %138 = vector.broadcast %cst_27 : f32 to vector<16x64xf32>
    %139 = arith.mulf %135, %138 : vector<16x64xf32>
    %140 = math.erf %139 : vector<16x64xf32>
    %cst_28 = arith.constant 1.000000e+00 : f32
    %141 = vector.broadcast %cst_28 : f32 to vector<16x64xf32>
    %142 = arith.addf %141, %140 : vector<16x64xf32>
    %143 = arith.mulf %137, %142 : vector<16x64xf32>
    %cst_29 = arith.constant dense<0.000000e+00> : vector<16x32xf32>
    %144 = tpu.matmul %143, %3, %cst_29 {dimension_numbers = #tpu.dot_dimension_numbers<[1], [0], [0], [1], [0, 0, 1, 1], [], []>} : vector<16x64xf32>, vector<64x32xf32>, vector<16x32xf32> -> vector<16x32xf32>
    %145 = vector.shape_cast %15 : vector<32xf32> to vector<1x32xf32>
    %146 = vector.broadcast %145 : vector<1x32xf32> to vector<16x32xf32>
    %147 = arith.addf %144, %146 : vector<16x32xf32>
    %148 = arith.addf %104, %147 : vector<16x32xf32>
    %c0_30 = arith.constant 0 : index
    %c0_31 = arith.constant 0 : index
    %149 = vector.load %arg4[%c0_30, %c0_31] : memref<16x32xf32, #tpu.memory_space<vmem>>, vector<16x32xf32>
    tpu.vector_store %arg4[%c0_30, %c0_31], %148 {strides = array<i32>} : memref<16x32xf32, #tpu.memory_space<vmem>>, vector<16x32xf32>,
    return
  }
}

</mosaic_0001>

<bundles_post_ra>
// kernel: tpu_custom_call.1
= control target key start
LH: loop header
LB: loop body
LE: loop exit
PB: predicated region body
PF: predicated region fallthrough
CT: control target
= control target key end

     0   :  { %9 = vsyncpa [#allocation3], 0  ;;  %s2151_s0 = inlined_call_operand.hbm [shape: f32[16,32], index: 0, kind: input, shape index: {}]   ;;  %s2152_s1 = inlined_call_operand.vmem [shape: f32[24,128], index: 1, kind: input, shape index: {}]   ;;  %s2153_s2 = inlined_call_operand.vmem [shape: f32[32,192], index: 2, kind: input, shape index: {}]   ;;  %s2154_s3 = inlined_call_operand.vmem [shape: f32[64,32], index: 3, kind: input, shape index: {}]   ;;  %s2155_s4 = inlined_call_operand.hbm [shape: f32[16,32], index: 4, kind: output, shape index: {}]  }
   0x1   :  { %10 = vsyncpa [#allocation4], 0  ;;  %s1850_s15 = smov [#allocation2]   ;;  %s1802_s19 = scalar_lea.hbm %s2151_s0, 256 }
   0x2   :  { %s16_s16 = sshll.u32 %s1850_s15, 4  ;;  %p1803_p0 = scmp.ne.s32.totalorder %s2151_s0, %s1802_s19  ;;  %s17_s16 = int_to_ptr.vmem [resolvable:$true] %s16_s16 }
   0x3   :  { %p1806_p1 = scmp.lt.u32.totalorder %s1802_s19, %s2151_s0 }
   0x5   :  { %p1808_p2 = pnand %p1806_p1, %p1803_p0 }
   0x7   :  { %1811 = shalt.err (!%p1808_p2)
}
   0x8   :  { %s1812_s24 = scalar_lea.vmem %s17_s16, 256  ;;  %p1817_p4 = scmp.lt.s32.totalorder %s17_s16, %s17_s16 }
   0x9   :  { %p1813_p3 = scmp.ne.s32.totalorder %s17_s16, %s1812_s24  ;;  %p1818_p5 = scmp.lt.s32.totalorder %s1812_s24, %s1812_s24 }
   0xb   :  { %p1819_p6 = por %p1818_p5, %p1817_p4 }
   0xd   :  { %p1820_p7 = pnand %p1819_p6, %p1813_p3 }
   0xf   :  { %1823 = shalt.err (!%p1820_p7)
}
  0x10   :  { %s1851_s25 = smov 128   ;;  %s1852_s26 = smov 8  }
  0x11   :  { %22 = dma.hbm_to_vmem [thread:$0]  %s2151_s0, 256, %s17_s16, [#allocation3], %s1851_s25, %s1851_s25, %s1852_s26  }
  0x12   :  { %1846 = dma.done.wait [#allocation3], 256  }
  0x13   :  { %1847 = vsyncadd [#allocation3], 4294967040  ;;  %vm53_vm0 = vcmask 261120   ;;  %v1902_v0 = vld [vmem:[#allocation2] sm:$0xff]  ;;  %v1904_v1 = vld [vmem:[#allocation2 + $0x8] sm:$0xff]  ;;  %v99_v33 = vlaneseq  ;;  %vm212_vm5 = vcmask 64512  }
  0x14   :  { %v54_v2 = vsel %vm53_vm0, %v1902_v0, 0.0  ;;  %v57_v3 = vsel %vm53_vm0, %v1904_v1, 0.0  ;;  %v1917_v14 = vld [vmem:[%s2153_s2] sm:$0xff]  ;;  %v1922_v15 = vld [vmem:[%s2153_s2 + $0x10] sm:$0xff]  ;;  %s1853_s12 = smov 120   ;;  %s1854_s13 = smov 112   ;;  %vm1966_vm6 = vmpackc.low %vm212_vm5, %vm212_vm5 }
  0x15   :  { %55 = vadd.xlane.f32.xlu0 %v54_v2  ;;  %v1927_v16 = vld [vmem:[%s2153_s2 + $0x20] sm:$0xff]  ;;  %v1740_v17 = vpack.i.bf16 %v1922_v15, %v1917_v14  ;;  %v1608_v18 = vpack.c.bf16 %v1922_v15, %v1917_v14  ;;  %v1936_v19 = vld [vmem:[%s2153_s2 + $0x30] sm:$0xff]  ;;  %v1940_v38 = vshrl.u32 %v99_v33, 7  ;;  %s1855_s14 = smov 104   ;;  %s1856_s15 = smov 96   ;;  %vm557_vm7 = vcmask 130048  }
  0x16   :  { %v1612_v20 = vpack.c.bf16 %v1936_v19, %v1927_v16  ;;  %v1946_v40 = vld [vmem:[%s2152_s1] sm:$0xff]  ;;  %s1858_s20 = smov 32   ;;  %s1859_s21 = smov 16   ;;  %vm1046_vm8 = vcmask 195584   ;;  %vm1305_vm13 = vcmask 523264  }
  0x17   :  { %1609 = vmatprep.subr.bf16.mxu1 %v1608_v18  ;;  %v101_v39 = vsub.s32 0, %v1940_v38  ;;  %v109_v44 = vsub.s32 1, %v1940_v38  ;;  %s1860_s22 = smov 24  }
  0x18   :  { %1611 = vmatpush3.bf16.msra.mxu1 %v1608_v18 }
  0x19   :  { %58 = vadd.xlane.f32.xlu0 %v57_v3  ;;  %1613 = vmatprep.subr.bf16.mxu1 %v1612_v20  ;;  %v102_v42 = vrot.slane %v1946_v40, %v101_v39  ;;  %v110_v50 = vrot.slane %v1946_v40, %v109_v44 }
  0x1c   :  { %1615 = vmatpush3.bf16.msra.mxu1 %v1612_v20 }
  0xa2   :  { %v56_v4 = vpop.xlane.xlu0 %55 }
  0xa3   :  { %v61_v5 = vmul.f32 0.03125, %v56_v4 }
  0xa5   :  { %v63_v6 = vsub.f32 %v1902_v0, %v61_v5 }
  0xa6   :  { %v59_v7 = vpop.xlane.xlu0 %58 }
  0xa7   :  { %v62_v8 = vmul.f32 0.03125, %v59_v7  ;;  %v65_v9 = vmul.f32 %v63_v6, %v63_v6  ;;  %v103_v47 = vmul.f32 %v102_v42, %v63_v6 }
  0xa9   :  { %v64_v10 = vsub.f32 %v1904_v1, %v62_v8  ;;  %v67_v11 = vsel %vm53_vm0, %v65_v9, 0.0 }
  0xaa   :  { %68 = vadd.xlane.f32.xlu1 %v67_v11 }
  0xab   :  { %v66_v12 = vmul.f32 %v64_v10, %v64_v10  ;;  %v104_v53 = vmul.f32 %v102_v42, %v64_v10 }
  0xad   :  { %v70_v13 = vsel %vm53_vm0, %v66_v12, 0.0 }
  0xae   :  { %71 = vadd.xlane.f32.xlu1 %v70_v13 }
 0x137   :  { %v69_v21 = vpop.xlane.xlu1 %68 }
 0x138   :  { %v73_v22 = vmul.f32 0.032258064, %v69_v21 }
 0x13a   :  { %1750 = vrsqrt.f32 %v73_v22  ;;  %vm77_vm1 = vcmp.eq.f32.partialorder %v73_v22, inf  ;;  %v80_v27 = vand.u32 2147483648, %v73_v22  ;;  %vm79_vm2 = vcmp.eq.f32.partialorder %v73_v22, 0.0 }
 0x13b   :  { %v72_v23 = vpop.xlane.xlu1 %71 }
 0x13c   :  { %v74_v24 = vmul.f32 0.032258064, %v72_v23 }
 0x13e   :  { %1752 = vrsqrt.f32 %v74_v24  ;;  %vm84_vm3 = vcmp.eq.f32.partialorder %v74_v24, inf  ;;  %v87_v34 = vand.u32 2147483648, %v74_v24  ;;  %vm86_vm4 = vcmp.eq.f32.partialorder %v74_v24, 0.0 }
 0x144   :  { %v1751_v25 = vpop.eup %1750 }
 0x145   :  { %v76_v26 = vmul.f32 %v1751_v25, %v73_v22 }
 0x147   :  { %v78_v28 = vsel %vm77_vm1, %v73_v22, %v76_v26 }
 0x148   :  { %v1753_v29 = vpop.eup %1752  ;;  %v81_v30 = vsel %vm79_vm2, %v80_v27, %v78_v28 }
 0x149   :  { %v83_v31 = vmul.f32 %v1753_v29, %v74_v24  ;;  %v89_v32 = vadd.f32 1e-06, %v81_v30  ;;  %v36_v30 = vld [vmem:[%s2152_s1 + $0x10] sm:$0xff] }
 0x14b   :  { %v85_v35 = vsel %vm84_vm3, %v74_v24, %v83_v31  ;;  %1754 = vrcp.f32 %v89_v32  ;;  %v35_v31 = vld [vmem:[%s2152_s1 + $0x8] sm:$0xff]  ;;  %s1857_s1 = smov 64  }
 0x14c   :  { %v88_v36 = vsel %vm86_vm4, %v87_v34, %v85_v35 }
 0x14d   :  { %v90_v37 = vadd.f32 1e-06, %v88_v36 }
 0x14f   :  { %1756 = vrcp.f32 %v90_v37 }
 0x155   :  { %v1755_v41 = vpop.eup %1754 }
 0x156   :  { %v93_v43 = vmul.f32 %v1755_v41, %v89_v32 }
 0x158   :  { %v95_v45 = vsub.f32 2.0, %v93_v43 }
 0x159   :  { %v1757_v46 = vpop.eup %1756 }
 0x15a   :  { %v94_v48 = vmul.f32 %v1757_v46, %v90_v37  ;;  %v97_v49 = vmul.f32 %v1755_v41, %v95_v45 }
 0x15c   :  { %v96_v51 = vsub.f32 2.0, %v94_v48  ;;  %v105_v52 = vmul.f32 %v103_v47, %v97_v49 }
 0x15e   :  { %v98_v54 = vmul.f32 %v1757_v46, %v96_v51  ;;  %v111_v55 = vadd.f32 %v110_v50, %v105_v52 }
 0x160   :  { %v106_v56 = vmul.f32 %v104_v53, %v98_v54  ;;  %1508 = vmatprep.mubr.msk.f32.mxu1 %vm53_vm0, %v111_v55 }
 0x162   :  { %v112_v57 = vadd.f32 %v110_v50, %v106_v56 }
 0x164   :  { %1509 = vmatmul.mubr.msk.f32.vlgmr.msra.gmra.mrb[0].mxu1 %vm53_vm0, %v112_v57 }
 0x237   :  { %v1510_v58 = vpop.f32.mrb[0].mxu1 }
 0x238   :  { %198 = vrot.lane.b32.xlu1 %v1510_v58, %s1853_s12  ;;  %v185_v59 = vpop.f32.mrb[1].mxu1 }
 0x239   :  { %196 = vrot.lane.b32.xlu0 %v185_v59, %s1853_s12  ;;  %1515 = vmatprep.mubr.msk.f32.mxu1 %vm212_vm5, %v185_v59  ;;  %v1954_v60 = vpack.i.bf16 %v1510_v58, %v185_v59 }
 0x23c   :  { %202 = vrot.lane.b32.xlu1 %v1510_v58, %s1854_s13 }
 0x23d   :  { %204 = vrot.lane.b32.xlu0 %v185_v59, %s1855_s14 }
 0x240   :  { %200 = vrot.lane.b32.xlu1 %v185_v59, %s1854_s13 }
 0x241   :  { %1701 = vrot.lane.b32.xlu0 %v1954_v60, %s1856_s15 }
 0x244   :  { %206 = vrot.lane.b32.xlu1 %v1510_v58, %s1855_s14 }
 0x2aa   :  { %v199_v61 = vpop.permute.xlu1 %198 }
 0x2ab   :  { %v197_v62 = vpop.permute.xlu0 %196 }
 0x2ac   :  { %v1957_v63 = vpack.i.bf16 %v199_v61, %v197_v62  ;;  %1522 = vmatprep.mubr.msk.f32.mxu0 %vm212_vm5, %v197_v62 }
 0x2ae   :  { %v203_v2 = vpop.permute.xlu1 %202  ;;  %1706 = vrot.lane.b32.xlu1 %v1957_v63, %s1856_s15 }
 0x2af   :  { %v205_v3 = vpop.permute.xlu0 %204 }
 0x2b2   :  { %v201_v4 = vpop.permute.xlu1 %200 }
 0x2b3   :  { %v1961_v5 = vpack.i.bf16 %v203_v2, %v201_v4  ;;  %v1702_v6 = vpop.permute.xlu0 %1701 }
 0x2b4   :  { %v1704_v7 = vunpack.i.h.bf16 %v1702_v6  ;;  %v1703_v8 = vunpack.i.l.bf16 %v1702_v6 }
 0x2b5   :  { %1711 = vrot.lane.b32.xlu0 %v1961_v5, %s1856_s15 }
 0x2b6   :  { %v1616_v10 = vpack.c.bf16 %v1704_v7, %v1703_v8  ;;  %v207_v11 = vpop.permute.xlu1 %206 }
 0x2b7   :  { %v1970_v12 = vpack.i.bf16 %v207_v11, %v205_v3 }
 0x2b8   :  { %1618 = vmatprep.subr.msk.bf16.mxu1 %vm1966_vm6, %v1616_v10 }
 0x2b9   :  { %1716 = vrot.lane.b32.xlu1 %v1970_v12, %s1856_s15  ;;  %1621 = vmatpush3.bf16.xpose.msk.msra.mxu1 %vm1966_vm6, %v1616_v10 }
 0x2c0   :  { %1516 = vmatmul.mubr.msk.f32.vlgmr.msra.gmra.mrb[2].mxu1 %vm212_vm5, %v1510_v58 }
 0x2c1   :  { %1529 = vmatprep.mubr.msk.f32.mxu1 %vm212_vm5, %v201_v4 }
 0x320   :  { %v1707_v13 = vpop.permute.xlu1 %1706 }
 0x321   :  { %v1709_v18 = vunpack.i.h.bf16 %v1707_v13  ;;  %v1708_v20 = vunpack.i.l.bf16 %v1707_v13 }
 0x323   :  { %v1622_v21 = vpack.c.bf16 %v1709_v18, %v1708_v20 }
 0x325   :  { %1624 = vmatprep.subr.msk.bf16.mxu0 %vm1966_vm6, %v1622_v21 }
 0x326   :  { %1627 = vmatpush3.bf16.xpose.msk.msra.mxu0 %vm1966_vm6, %v1622_v21 }
 0x327   :  { %v1712_v22 = vpop.permute.xlu0 %1711 }
 0x328   :  { %v1714_v23 = vunpack.i.h.bf16 %v1712_v22  ;;  %v1713_v24 = vunpack.i.l.bf16 %v1712_v22 }
 0x32a   :  { %v1628_v25 = vpack.c.bf16 %v1714_v23, %v1713_v24 }
 0x32b   :  { %v1717_v26 = vpop.permute.xlu1 %1716 }
 0x32c   :  { %v1719_v27 = vunpack.i.h.bf16 %v1717_v26  ;;  %v1718_v28 = vunpack.i.l.bf16 %v1717_v26  ;;  %1630 = vmatprep.subr.msk.bf16.mxu1 %vm1966_vm6, %v1628_v25 }
 0x32d   :  { %1523 = vmatmul.mubr.msk.f32.vlgmr.msra.gmra.mrb[0].mxu0 %vm212_vm5, %v199_v61  ;;  %1633 = vmatpush3.bf16.xpose.msk.msra.mxu1 %vm1966_vm6, %v1628_v25 }
 0x32e   :  { %v1634_v29 = vpack.c.bf16 %v1719_v27, %v1718_v28  ;;  %1536 = vmatprep.mubr.msk.f32.mxu0 %vm212_vm5, %v205_v3 }
 0x330   :  { %1636 = vmatprep.subr.msk.bf16.mxu0 %vm1966_vm6, %v1634_v29 }
 0x331   :  { %1639 = vmatpush3.bf16.xpose.msk.msra.mxu0 %vm1966_vm6, %v1634_v29 }
 0x334   :  { %1530 = vmatmul.mubr.msk.f32.vlgmr.msra.gmra.mrb[4].mxu1 %vm212_vm5, %v203_v2 }
 0x338   :  { %1537 = vmatmul.mubr.msk.f32.vlgmr.msra.gmra.mrb[2].mxu0 %vm212_vm5, %v207_v11 }
 0x393   :  { %v1517_v32 = vpop.f32.mrb[2].mxu1 }
 0x394   :  { %v293_v33 = vadd.f32 %v1517_v32, %v36_v30  ;;  %v287_v34 = vpop.f32.mrb[3].mxu1 }
 0x395   :  { %v288_v35 = vadd.f32 %v287_v34, %v35_v31 }
 0x396   :  { %v561_v36 = vsel %vm557_vm7, %v293_v33, -inf }
 0x397   :  { %562 = vmax.xlane.f32.xlu1 %v561_v36  ;;  %v558_v37 = vsel %vm557_vm7, %v288_v35, -inf }
 0x398   :  { %559 = vmax.xlane.f32.xlu0 %v558_v37 }
 0x400   :  { %v1524_v39 = vpop.f32.mrb[0].mxu0 }
 0x401   :  { %v380_v41 = vadd.f32 %v1524_v39, %v36_v30  ;;  %v374_v42 = vpop.f32.mrb[1].mxu0 }
 0x402   :  { %v375_v43 = vadd.f32 %v374_v42, %v35_v31 }
 0x403   :  { %v567_v44 = vsel %vm557_vm7, %v380_v41, -inf }
 0x404   :  { %568 = vmax.xlane.f32.xlu0 %v567_v44  ;;  %v564_v46 = vsel %vm557_vm7, %v375_v43, -inf }
 0x407   :  { %v1531_v45 = vpop.f32.mrb[4].mxu1 }
 0x408   :  { %v467_v47 = vadd.f32 %v1531_v45, %v36_v30  ;;  %v461_v48 = vpop.f32.mrb[5].mxu1  ;;  %565 = vmax.xlane.f32.xlu0 %v564_v46 }
 0x409   :  { %v462_v49 = vadd.f32 %v461_v48, %v35_v31 }
 0x40a   :  { %v573_v50 = vsel %vm557_vm7, %v467_v47, -inf }
 0x40b   :  { %v1538_v51 = vpop.f32.mrb[2].mxu0  ;;  %574 = vmax.xlane.f32.xlu1 %v573_v50  ;;  %v570_v52 = vsel %vm557_vm7, %v462_v49, -inf }
 0x40c   :  { %v554_v53 = vadd.f32 %v1538_v51, %v36_v30  ;;  %v548_v54 = vpop.f32.mrb[3].mxu0  ;;  %571 = vmax.xlane.f32.xlu0 %v570_v52 }
 0x40d   :  { %v549_v55 = vadd.f32 %v548_v54, %v35_v31 }
 0x40e   :  { %v579_v56 = vsel %vm557_vm7, %v554_v53, -inf }
 0x40f   :  { %580 = vmax.xlane.f32.xlu1 %v579_v56  ;;  %v576_v57 = vsel %vm557_vm7, %v549_v55, -inf }
 0x410   :  { %577 = vmax.xlane.f32.xlu0 %v576_v57 }
 0x424   :  { %v563_v58 = vpop.xlane.xlu1 %562 }
 0x425   :  { %v583_v59 = vsub.f32 %v293_v33, %v563_v58  ;;  %v560_v61 = vpop.xlane.xlu0 %559 }
 0x426   :  { %v582_v62 = vsub.f32 %v288_v35, %v560_v61 }
 0x427   :  { %v592_v2 = vmul.f32 1.442695, %v583_v59 }
 0x428   :  { %v590_v3 = vmul.f32 1.442695, %v582_v62 }
 0x429   :  { %1758 = vpow2.f32 %v592_v2 }
 0x42a   :  { %1760 = vpow2.f32 %v590_v3 }
 0x433   :  { %v2009_v4 = vpop.eup %1758 }
 0x434   :  { %v1761_v6 = vpop.eup %1760  ;;  %v609_v7 = vsel %vm557_vm7, %v2009_v4, 0.0 }
 0x435   :  { %610 = vadd.xlane.f32.xlu1 %v609_v7  ;;  %v606_v8 = vsel %vm557_vm7, %v1761_v6, 0.0 }
 0x436   :  { %607 = vadd.xlane.f32.xlu0 %v606_v8 }
 0x491   :  { %v569_v9 = vpop.xlane.xlu0 %568 }
 0x492   :  { %v585_v10 = vsub.f32 %v380_v41, %v569_v9 }
 0x494   :  { %v596_v11 = vmul.f32 1.442695, %v585_v10 }
 0x495   :  { %v566_v13 = vpop.xlane.xlu0 %565 }
 0x496   :  { %1762 = vpow2.f32 %v596_v11  ;;  %v584_v18 = vsub.f32 %v375_v43, %v566_v13 }
 0x498   :  { %v594_v20 = vmul.f32 1.442695, %v584_v18  ;;  %v575_v21 = vpop.xlane.xlu1 %574 }
 0x499   :  { %v587_v22 = vsub.f32 %v467_v47, %v575_v21  ;;  %v572_v23 = vpop.xlane.xlu0 %571 }
 0x49a   :  { %1764 = vpow2.f32 %v594_v20  ;;  %v586_v24 = vsub.f32 %v462_v49, %v572_v23 }
 0x49b   :  { %v600_v25 = vmul.f32 1.442695, %v587_v22 }
 0x49c   :  { %v598_v26 = vmul.f32 1.442695, %v586_v24  ;;  %v581_v27 = vpop.xlane.xlu1 %580 }
 0x49d   :  { %1766 = vpow2.f32 %v600_v25  ;;  %v589_v28 = vsub.f32 %v554_v53, %v581_v27  ;;  %v578_v29 = vpop.xlane.xlu0 %577 }
 0x49e   :  { %1768 = vpow2.f32 %v598_v26  ;;  %v588_v30 = vsub.f32 %v549_v55, %v578_v29 }
 0x49f   :  { %v604_v31 = vmul.f32 1.442695, %v589_v28 }
 0x4a0   :  { %v2014_v32 = vpop.eup %1762  ;;  %v602_v33 = vmul.f32 1.442695, %v588_v30 }
 0x4a1   :  { %1770 = vpow2.f32 %v604_v31  ;;  %v615_v34 = vsel %vm557_vm7, %v2014_v32, 0.0 }
 0x4a2   :  { %1772 = vpow2.f32 %v602_v33  ;;  %616 = vadd.xlane.f32.xlu1 %v615_v34 }
 0x4a4   :  { %v2018_v35 = vpop.eup %1764 }
 0x4a5   :  { %v612_v36 = vsel %vm557_vm7, %v2018_v35, 0.0 }
 0x4a6   :  { %613 = vadd.xlane.f32.xlu0 %v612_v36 }
 0x4a7   :  { %v2022_v37 = vpop.eup %1766 }
 0x4a8   :  { %v2024_v39 = vpop.eup %1768  ;;  %v621_v41 = vsel %vm557_vm7, %v2022_v37, 0.0 }
 0x4a9   :  { %622 = vadd.xlane.f32.xlu1 %v621_v41  ;;  %v618_v42 = vsel %vm557_vm7, %v2024_v39, 0.0 }
 0x4aa   :  { %619 = vadd.xlane.f32.xlu0 %v618_v42 }
 0x4ab   :  { %v2030_v43 = vpop.eup %1770 }
 0x4ac   :  { %v2032_v44 = vpop.eup %1772  ;;  %v627_v45 = vsel %vm557_vm7, %v2030_v43, 0.0 }
 0x4ad   :  { %628 = vadd.xlane.f32.xlu1 %v627_v45  ;;  %v624_v46 = vsel %vm557_vm7, %v2032_v44, 0.0 }
 0x4ae   :  { %625 = vadd.xlane.f32.xlu0 %v624_v46 }
 0x4be   :  { %1726 = vrot.lane.b32.xlu1 %v1957_v63, %s1857_s1 }
 0x4c2   :  { %1731 = vrot.lane.b32.xlu1 %v1961_v5, %s1857_s1  ;;  %v611_v63 = vpop.xlane.xlu1 %610 }
 0x4c3   :  { %v608_v47 = vpop.xlane.xlu0 %607 }
 0x4c4   :  { %1774 = vrcp.f32 %v608_v47  ;;  %1721 = vrot.lane.b32.xlu0 %v1954_v60, %s1857_s1 }
 0x4c5   :  { %1776 = vrcp.f32 %v611_v63 }
 0x4c6   :  { %1736 = vrot.lane.b32.xlu1 %v1970_v12, %s1857_s1 }
 0x4c8   :  { %1741 = vrot.lane.b32.xlu0 %v1740_v17, %s1858_s20 }
 0x4ce   :  { %v1775_v48 = vpop.eup %1774 }
 0x4cf   :  { %v638_v49 = vmul.f32 %v1775_v48, %v608_v47  ;;  %v1777_v12 = vpop.eup %1776 }
 0x4d0   :  { %v639_v55 = vmul.f32 %v1777_v12, %v611_v63 }
 0x4d1   :  { %v646_v50 = vsub.f32 2.0, %v638_v49 }
 0x4d2   :  { %v647_v15 = vsub.f32 2.0, %v639_v55 }
 0x4d3   :  { %v654_v51 = vmul.f32 %v1775_v48, %v646_v50 }
 0x4d4   :  { %v655_v9 = vmul.f32 %v1777_v12, %v647_v15 }
 0x4d5   :  { %v662_v52 = vmul.f32 %v1761_v6, %v654_v51 }
 0x4d6   :  { %v663_v29 = vmul.f32 %v2009_v4, %v655_v9 }
 0x4d7   :  { %1543 = vmatprep.mubr.msk.f32.mxu1 %vm557_vm7, %v662_v52 }
 0x52f   :  { %v617_v5 = vpop.xlane.xlu1 %616 }
 0x530   :  { %1778 = vrcp.f32 %v617_v5 }
 0x533   :  { %v614_v60 = vpop.xlane.xlu0 %613 }
 0x534   :  { %1780 = vrcp.f32 %v614_v60 }
 0x536   :  { %v623_v53 = vpop.xlane.xlu1 %622 }
 0x537   :  { %1782 = vrcp.f32 %v623_v53  ;;  %v620_v54 = vpop.xlane.xlu0 %619 }
 0x538   :  { %1784 = vrcp.f32 %v620_v54 }
 0x53a   :  { %v629_v56 = vpop.xlane.xlu1 %628  ;;  %v1779_v57 = vpop.eup %1778 }
 0x53b   :  { %1786 = vrcp.f32 %v629_v56  ;;  %v626_v14 = vpop.xlane.xlu0 %625  ;;  %v641_v58 = vmul.f32 %v1779_v57, %v617_v5 }
 0x53c   :  { %1788 = vrcp.f32 %v626_v14 }
 0x53d   :  { %v649_v13 = vsub.f32 2.0, %v641_v58 }
 0x53e   :  { %v1781_v17 = vpop.eup %1780  ;;  %v1727_v59 = vpop.permute.xlu1 %1726 }
 0x53f   :  { %v640_v61 = vmul.f32 %v1781_v17, %v614_v60  ;;  %v1722_v62 = vpop.permute.xlu0 %1721  ;;  %v1729_v2 = vunpack.i.h.bf16 %v1727_v59  ;;  %v1728_v3 = vunpack.i.l.bf16 %v1727_v59  ;;  %v657_v34 = vmul.f32 %v1779_v57, %v649_v13 }
 0x540   :  { %v1724_v6 = vunpack.i.h.bf16 %v1722_v62  ;;  %v1723_v7 = vunpack.i.l.bf16 %v1722_v62 }
 0x541   :  { %v1783_v8 = vpop.eup %1782  ;;  %v648_v10 = vsub.f32 2.0, %v640_v61  ;;  %v1644_v27 = vpack.c.bf16 %v1729_v2, %v1728_v3 }
 0x542   :  { %v1785_v11 = vpop.eup %1784  ;;  %v643_v18 = vmul.f32 %v1783_v8, %v623_v53  ;;  %v1640_v20 = vpack.c.bf16 %v1724_v6, %v1723_v7  ;;  %v1732_v21 = vpop.permute.xlu1 %1731 }
 0x543   :  { %v656_v22 = vmul.f32 %v1781_v17, %v648_v10  ;;  %v642_v23 = vmul.f32 %v1785_v11, %v620_v54  ;;  %v1734_v24 = vunpack.i.h.bf16 %v1732_v21  ;;  %v1733_v25 = vunpack.i.l.bf16 %v1732_v21 }
 0x544   :  { %v651_v26 = vsub.f32 2.0, %v643_v18  ;;  %1641 = vmatprep.subr.bf16.mxu1 %v1640_v20 }
 0x545   :  { %v1787_v28 = vpop.eup %1786  ;;  %v650_v30 = vsub.f32 2.0, %v642_v23  ;;  %v1648_v31 = vpack.c.bf16 %v1734_v24, %v1733_v25  ;;  %1643 = vmatpush3.bf16.msra.mxu1 %v1640_v20  ;;  %v664_v36 = vmul.f32 %v2018_v35, %v656_v22  ;;  %v665_v35 = vmul.f32 %v2014_v32, %v657_v34 }
 0x546   :  { %v1789_v33 = vpop.eup %1788  ;;  %v659_v41 = vmul.f32 %v1783_v8, %v651_v26  ;;  %v645_v42 = vmul.f32 %v1787_v28, %v629_v56  ;;  %v1737_v45 = vpop.permute.xlu1 %1736  ;;  %1645 = vmatprep.subr.bf16.mxu1 %v1644_v27  ;;  %v1745_v32 = vpack.i.bf16 %v1936_v19, %v1927_v16 }
 0x547   :  { %v658_v46 = vmul.f32 %v1785_v11, %v650_v30  ;;  %v644_v47 = vmul.f32 %v1789_v33, %v626_v14  ;;  %v1739_v48 = vunpack.i.h.bf16 %v1737_v45  ;;  %v1738_v49 = vunpack.i.l.bf16 %v1737_v45  ;;  %1649 = vmatprep.subr.bf16.mxu0 %v1648_v31  ;;  %v42_v45 = vld [vmem:[%s2153_s2 + $0x28] sm:$0xff] }
 0x548   :  { %v653_v50 = vsub.f32 2.0, %v645_v42  ;;  %1544 = vmatmul.mubr.msk.f32.vlgmr.msra.gmra.mrb[6].mxu1 %vm557_vm7, %v663_v29  ;;  %1651 = vmatpush3.bf16.msra.mxu0 %v1648_v31  ;;  %v667_v63 = vmul.f32 %v2022_v37, %v659_v41  ;;  %v1742_v37 = vpop.permute.xlu0 %1741  ;;  %v38_v41 = vld [vmem:[%s2153_s2 + $0x8] sm:$0xff]  ;;  %v40_v42 = vld [vmem:[%s2153_s2 + $0x18] sm:$0xff] }
 0x549   :  { %v666_v4 = vmul.f32 %v2024_v39, %v658_v46  ;;  %v652_v51 = vsub.f32 2.0, %v644_v47  ;;  %v1652_v52 = vpack.c.bf16 %v1739_v48, %v1738_v49  ;;  %1647 = vmatpush3.bf16.msra.mxu1 %v1644_v27  ;;  %1550 = vmatprep.mubr.msk.f32.mxu1 %vm557_vm7, %v664_v36  ;;  %v1744_v53 = vunpack.i.h.bf16 %v1742_v37  ;;  %v44_v47 = vld [vmem:[%s2153_s2 + $0x38] sm:$0xff] }
 0x54a   :  { %v661_v5 = vmul.f32 %v1787_v28, %v653_v50  ;;  %1746 = vrot.lane.b32.xlu1 %v1745_v32, %s1858_s20  ;;  %v1743_v54 = vunpack.i.l.bf16 %v1742_v37  ;;  %v1664_v46 = vpack.c.bf16 %v40_v42, %v38_v41  ;;  %v1668_v48 = vpack.c.bf16 %v44_v47, %v42_v45 }
 0x54b   :  { %v660_v60 = vmul.f32 %v1789_v33, %v652_v51  ;;  %1557 = vmatprep.mubr.msk.f32.mxu0 %vm557_vm7, %v666_v4  ;;  %1653 = vmatprep.subr.bf16.mxu1 %v1652_v52 }
 0x54c   :  { %1551 = vmatmul.mubr.msk.f32.vlgmr.msra.gmra.mrb[8].mxu1 %vm557_vm7, %v665_v35  ;;  %1558 = vmatmul.mubr.msk.f32.vlgmr.msra.gmra.mrb[4].mxu0 %vm557_vm7, %v667_v63  ;;  %v669_v12 = vmul.f32 %v2030_v43, %v661_v5  ;;  %v1656_v55 = vpack.c.bf16 %v1744_v53, %v1743_v54 }
 0x54d   :  { %v668_v39 = vmul.f32 %v2032_v44, %v660_v60  ;;  %1655 = vmatpush3.bf16.msra.mxu1 %v1652_v52 }
 0x54e   :  { %1657 = vmatprep.subr.bf16.mxu0 %v1656_v55  ;;  %1665 = vmatprep.subr.bf16.mxu1 %v1664_v46 }
 0x54f   :  { %1564 = vmatprep.mubr.msk.f32.mxu1 %vm557_vm7, %v668_v39  ;;  %1659 = vmatpush3.bf16.msra.mxu0 %v1656_v55 }
 0x550   :  { %1565 = vmatmul.mubr.msk.f32.vlgmr.msra.gmra.mrb[10].mxu1 %vm557_vm7, %v669_v12 }
 0x551   :  { %1667 = vmatpush3.bf16.msra.mxu1 %v1664_v46 }
 0x552   :  { %1669 = vmatprep.subr.bf16.mxu1 %v1668_v48 }
 0x555   :  { %1671 = vmatpush3.bf16.msra.mxu1 %v1668_v48 }
 0x5bc   :  { %v1747_v56 = vpop.permute.xlu1 %1746 }
 0x5bd   :  { %v1749_v44 = vunpack.i.h.bf16 %v1747_v56  ;;  %v1748_v57 = vunpack.i.l.bf16 %v1747_v56  ;;  %v1194_v56 = vsub.s32 2, %v1940_v38 }
 0x5bf   :  { %v1660_v14 = vpack.c.bf16 %v1749_v44, %v1748_v57  ;;  %v1195_v57 = vrot.slane %v1946_v40, %v1194_v56 }
 0x5c1   :  { %1661 = vmatprep.subr.bf16.mxu0 %v1660_v14 }
 0x5c2   :  { %1663 = vmatpush3.bf16.msra.mxu0 %v1660_v14 }
 0x61b   :  { %v1545_v43 = vpop.f32.mrb[6].mxu1 }
 0x61c   :  { %v748_v15 = vpop.f32.mrb[7].mxu1 }
 0x61f   :  { %v1552_v17 = vpop.f32.mrb[8].mxu1  ;;  %v1559_v58 = vpop.f32.mrb[4].mxu0 }
 0x620   :  { %v922_v59 = vpop.f32.mrb[5].mxu0  ;;  %1022 = vrot.lane.b32.xlu1 %v1552_v17, %s1852_s26  ;;  %v835_v16 = vpop.f32.mrb[9].mxu1 }
 0x621   :  { %1020 = vrot.lane.b32.xlu0 %v835_v16, %s1852_s26 }
 0x623   :  { %v1566_v19 = vpop.f32.mrb[10].mxu1 }
 0x624   :  { %1030 = vrot.lane.b32.xlu1 %v1559_v58, %s1859_s21  ;;  %v1009_v61 = vpop.f32.mrb[11].mxu1 }
 0x625   :  { %1028 = vrot.lane.b32.xlu0 %v922_v59, %s1859_s21 }
 0x628   :  { %1038 = vrot.lane.b32.xlu1 %v1566_v19, %s1860_s22 }
 0x629   :  { %1036 = vrot.lane.b32.xlu0 %v1009_v61, %s1860_s22 }
 0x692   :  { %v1023_v62 = vpop.permute.xlu1 %1022 }
 0x693   :  { %v1021_v2 = vpop.permute.xlu0 %1020  ;;  %v1043_v9 = vsel %vm212_vm5, %v1545_v43, %v1023_v62  ;;  %v1202_v43 = vsub.s32 3, %v1940_v38 }
 0x694   :  { %v1042_v7 = vsel %vm212_vm5, %v748_v15, %v1021_v2 }
 0x695   :  { %v1203_v19 = vrot.slane %v1946_v40, %v1202_v43 }
 0x696   :  { %v1031_v3 = vpop.permute.xlu1 %1030 }
 0x697   :  { %v1029_v6 = vpop.permute.xlu0 %1028  ;;  %v1045_v13 = vsel %vm557_vm7, %v1043_v9, %v1031_v3  ;;  %v45_v9 = vld [vmem:[%s2154_s3] sm:$0xff] }
 0x698   :  { %v1044_v10 = vsel %vm557_vm7, %v1042_v7, %v1029_v6 }
 0x69a   :  { %v1039_v8 = vpop.permute.xlu1 %1038 }
 0x69b   :  { %v1037_v11 = vpop.permute.xlu0 %1036  ;;  %v1048_v20 = vsel %vm1046_vm8, %v1045_v13, %v1039_v8  ;;  %v47_v13 = vld [vmem:[%s2154_s3 + $0x10] sm:$0xff] }
 0x69c   :  { %v1047_v18 = vsel %vm1046_vm8, %v1044_v10, %v1037_v11  ;;  %v46_v10 = vld [vmem:[%s2154_s3 + $0x8] sm:$0xff] }
 0x69d   :  { %1575 = vmatprep.mubr.msk.f32.mxu0 %vm53_vm0, %v1047_v18  ;;  %v1672_v11 = vpack.c.bf16 %v46_v10, %v45_v9  ;;  %v48_v18 = vld [vmem:[%s2154_s3 + $0x18] sm:$0xff] }
 0x69e   :  { %1576 = vmatmul.mubr.msk.f32.vlgmr.msra.gmra.mrb[6].mxu0 %vm53_vm0, %v1048_v20  ;;  %v1676_v20 = vpack.c.bf16 %v48_v18, %v47_v13 }
 0x69f   :  { %1673 = vmatprep.subr.bf16.mxu0 %v1672_v11 }
 0x6a0   :  { %1675 = vmatpush3.bf16.msra.mxu0 %v1672_v11 }
 0x6a1   :  { %1677 = vmatprep.subr.bf16.mxu0 %v1676_v20 }
 0x6a4   :  { %1679 = vmatpush3.bf16.msra.mxu0 %v1676_v20 }
 0x771   :  { %v1577_v21 = vpop.f32.mrb[6].mxu0 }
 0x772   :  { %v2073_v22 = vadd.f32 %v1577_v21, %v1904_v1  ;;  %v1137_v23 = vpop.f32.mrb[7].mxu0  ;;  %v49_v21 = vld [vmem:[%s2154_s3 + $0x20] sm:$0xff] }
 0x773   :  { %v2076_v24 = vadd.f32 %v1137_v23, %v1902_v0  ;;  %v50_v23 = vld [vmem:[%s2154_s3 + $0x28] sm:$0xff] }
 0x774   :  { %v1151_v25 = vsel %vm53_vm0, %v2073_v22, 0.0 }
 0x775   :  { %1152 = vadd.xlane.f32.xlu1 %v1151_v25  ;;  %v1148_v26 = vsel %vm53_vm0, %v2076_v24, 0.0  ;;  %v1680_v25 = vpack.c.bf16 %v50_v23, %v49_v21 }
 0x776   :  { %1149 = vadd.xlane.f32.xlu0 %v1148_v26  ;;  %v51_v26 = vld [vmem:[%s2154_s3 + $0x30] sm:$0xff] }
 0x777   :  { %1681 = vmatprep.subr.bf16.mxu0 %v1680_v25 }
 0x778   :  { %1683 = vmatpush3.bf16.msra.mxu0 %v1680_v25 }
 0x802   :  { %v1153_v27 = vpop.xlane.xlu1 %1152 }
 0x803   :  { %v1155_v28 = vmul.f32 0.03125, %v1153_v27  ;;  %v1150_v29 = vpop.xlane.xlu0 %1149  ;;  %v52_v27 = vld [vmem:[%s2154_s3 + $0x38] sm:$0xff]  ;;  %s1861_s3 = smov [#allocation5]  }
 0x804   :  { %v1154_v30 = vmul.f32 0.03125, %v1150_v29  ;;  %v1208_v29 = vsub.s32 4, %v1940_v38  ;;  %s1396_s20 = sshll.u32 %s1861_s3, 4  ;;  %s1397_s20 = int_to_ptr.vmem [resolvable:$true] %s1396_s20 }
 0x805   :  { %v1157_v31 = vsub.f32 %v2073_v22, %v1155_v28  ;;  %v1684_v28 = vpack.c.bf16 %v52_v27, %v51_v26  ;;  %s1824_s21 = scalar_lea.vmem %s1397_s20, 256  ;;  %p1829_p9 = scmp.lt.s32.totalorder %s1397_s20, %s1397_s20 }
 0x806   :  { %v1156_v1 = vsub.f32 %v2076_v24, %v1154_v30  ;;  %v1209_v30 = vrot.slane %v1946_v40, %v1208_v29  ;;  %p1825_p8 = scmp.ne.s32.totalorder %s1397_s20, %s1824_s21  ;;  %p1830_p10 = scmp.lt.s32.totalorder %s1824_s21, %s1824_s21 }
 0x807   :  { %v1159_v34 = vmul.f32 %v1157_v31, %v1157_v31  ;;  %v1197_v2 = vmul.f32 %v1195_v57, %v1157_v31  ;;  %1685 = vmatprep.subr.bf16.mxu0 %v1684_v28 }
 0x808   :  { %v1158_v33 = vmul.f32 %v1156_v1, %v1156_v1  ;;  %v1196_v58 = vmul.f32 %v1195_v57, %v1156_v1  ;;  %1687 = vmatpush3.bf16.msra.mxu0 %v1684_v28  ;;  %p1831_p11 = por %p1830_p10, %p1829_p9 }
 0x809   :  { %v1163_v36 = vsel %vm53_vm0, %v1159_v34, 0.0 }
 0x80a   :  { %v1160_v0 = vsel %vm53_vm0, %v1158_v33, 0.0  ;;  %p1832_p12 = pnand %p1831_p11, %p1825_p8 }
 0x80b   :  { %1161 = vadd.xlane.f32.xlu0 %v1160_v0 }
 0x80f   :  { %1164 = vadd.xlane.f32.xlu0 %v1163_v36 }
 0x898   :  { %v1162_v49 = vpop.xlane.xlu0 %1161 }
 0x899   :  { %v1166_v50 = vmul.f32 0.032258064, %v1162_v49 }
 0x89b   :  { %1790 = vrsqrt.f32 %v1166_v50  ;;  %vm1170_vm9 = vcmp.eq.f32.partialorder %v1166_v50, inf  ;;  %v1173_v63 = vand.u32 2147483648, %v1166_v50  ;;  %vm1172_vm10 = vcmp.eq.f32.partialorder %v1166_v50, 0.0 }
 0x89c   :  { %v1165_v4 = vpop.xlane.xlu0 %1164 }
 0x89d   :  { %v1167_v51 = vmul.f32 0.032258064, %v1165_v4  ;;  %v1303_v4 = vsub.s32 5, %v1940_v38 }
 0x89f   :  { %1792 = vrsqrt.f32 %v1167_v51  ;;  %vm1177_vm11 = vcmp.eq.f32.partialorder %v1167_v51, inf  ;;  %v1180_v37 = vand.u32 2147483648, %v1167_v51  ;;  %vm1179_vm12 = vcmp.eq.f32.partialorder %v1167_v51, 0.0 }
 0x8a5   :  { %v1791_v52 = vpop.eup %1790 }
 0x8a6   :  { %v1169_v35 = vmul.f32 %v1791_v52, %v1166_v50 }
 0x8a8   :  { %v1171_v5 = vsel %vm1170_vm9, %v1166_v50, %v1169_v35 }
 0x8a9   :  { %v1793_v60 = vpop.eup %1792  ;;  %v1174_v39 = vsel %vm1172_vm10, %v1173_v63, %v1171_v5 }
 0x8aa   :  { %v1176_v12 = vmul.f32 %v1793_v60, %v1167_v51  ;;  %v1182_v32 = vadd.f32 1e-06, %v1174_v39 }
 0x8ac   :  { %v1178_v53 = vsel %vm1177_vm11, %v1167_v51, %v1176_v12  ;;  %1794 = vrcp.f32 %v1182_v32  ;;  %v1304_v51 = vrot.slane %v1946_v40, %v1303_v4 }
 0x8ad   :  { %v1181_v54 = vsel %vm1179_vm12, %v1180_v37, %v1178_v53 }
 0x8ae   :  { %v1183_v55 = vadd.f32 1e-06, %v1181_v54 }
 0x8b0   :  { %1796 = vrcp.f32 %v1183_v55 }
 0x8b6   :  { %v1795_v44 = vpop.eup %1794 }
 0x8b7   :  { %v1186_v14 = vmul.f32 %v1795_v44, %v1182_v32 }
 0x8b9   :  { %v1188_v15 = vsub.f32 2.0, %v1186_v14 }
 0x8ba   :  { %v1797_v17 = vpop.eup %1796 }
 0x8bb   :  { %v1187_v59 = vmul.f32 %v1797_v17, %v1183_v55  ;;  %v1190_v16 = vmul.f32 %v1795_v44, %v1188_v15 }
 0x8bd   :  { %v1189_v61 = vsub.f32 2.0, %v1187_v59  ;;  %v1198_v62 = vmul.f32 %v1196_v58, %v1190_v16 }
 0x8bf   :  { %v1191_v3 = vmul.f32 %v1797_v17, %v1189_v61  ;;  %v1204_v6 = vadd.f32 %v1203_v19, %v1198_v62 }
 0x8c1   :  { %v1199_v7 = vmul.f32 %v1197_v2, %v1191_v3  ;;  %1586 = vmatprep.mubr.msk.f32.mxu1 %vm53_vm0, %v1204_v6 }
 0x8c3   :  { %v1205_v8 = vadd.f32 %v1203_v19, %v1199_v7 }
 0x8c5   :  { %1587 = vmatmul.mubr.msk.f32.vlgmr.msra.gmra.mrb[12].mxu1 %vm53_vm0, %v1205_v8 }
 0x998   :  { %v1588_v31 = vpop.f32.mrb[12].mxu1 }
 0x999   :  { %v1288_v1 = vadd.f32 %v1588_v31, %v1209_v30  ;;  %v1282_v33 = vpop.f32.mrb[13].mxu1 }
 0x99a   :  { %v1283_v0 = vadd.f32 %v1282_v33, %v1209_v30 }
 0x99b   :  { %v1294_v34 = vmul.f32 0.70710677, %v1288_v1  ;;  %v1292_v48 = vmul.f32 0.5, %v1288_v1 }
 0x99c   :  { %v1293_v36 = vmul.f32 0.70710677, %v1283_v0  ;;  %v1291_v46 = vmul.f32 0.5, %v1283_v0 }
 0x99d   :  { %1798 = verf.f32 %v1294_v34 }
 0x99e   :  { %1800 = verf.f32 %v1293_v36 }
 0x9a7   :  { %v1799_v41 = vpop.eup %1798 }
 0x9a8   :  { %v1801_v42 = vpop.eup %1800  ;;  %v1298_v45 = vadd.f32 1.0, %v1799_v41 }
 0x9a9   :  { %v1297_v47 = vadd.f32 1.0, %v1801_v42 }
 0x9aa   :  { %v1300_v50 = vmul.f32 %v1298_v45, %v1292_v48 }
 0x9ab   :  { %v1299_v49 = vmul.f32 %v1297_v47, %v1291_v46 }
 0x9ad   :  { %1605 = vmatprep.mubr.msk.f32.mxu0 %vm1305_vm13, %v1299_v49 }
 0x9ae   :  { %1606 = vmatmul.mubr.msk.f32.vlgmr.msra.gmra.mrb[8].mxu0 %vm1305_vm13, %v1300_v50 }
 0xa81   :  { %v1607_v52 = vpop.f32.mrb[8].mxu0 }
 0xa82   :  { %v1384_v35 = vadd.f32 %v1607_v52, %v1304_v51  ;;  %v1378_v63 = vpop.f32.mrb[9].mxu0 }
 0xa83   :  { %v1379_v5 = vadd.f32 %v1378_v63, %v1304_v51 }
 0xa84   :  { %v1388_v60 = vadd.f32 %v1384_v35, %v2073_v22 }
 0xa85   :  { %v1387_v39 = vadd.f32 %v1379_v5, %v2076_v24 }
 0xa86   :  { %1390 = vst.msk [vmem:[#allocation5 + $0x8] sm:$0xff] %vm53_vm0, %v1388_v60 }
 0xa87   :  { %1389 = vst.msk [vmem:[#allocation5] sm:$0xff] %vm53_vm0, %v1387_v39 }
 0xa88   :  { %1835 = shalt.err (!%p1832_p12)
}
 0xa89   :  { %s1836_s24 = scalar_lea.hbm %s2155_s4, 256 }
 0xa8a   :  { %p1837_p13 = scmp.ne.s32.totalorder %s2155_s4, %s1836_s24  ;;  %p1840_p0 = scmp.lt.u32.totalorder %s1836_s24, %s2155_s4 }
 0xa8c   :  { %p1842_p1 = pnand %p1840_p0, %p1837_p13 }
 0xa8e   :  { %1845 = shalt.err (!%p1842_p1)
}
 0xa8f   :  { %1402 = dma.vmem_to_hbm [thread:$0]  %s1397_s20, 256, %s2155_s4, [#allocation4], %s1851_s25, %s1851_s25, %s1852_s26  }
 0xa90   :  { %1848 = dma.done.wait [#allocation4], 256  }
 0xa91   :  { %1849 = vsyncadd [#allocation4], 4294967040 }
 0xa92   :  { %1406 = vsyncpa [#allocation3], 1 }
 0xa93   :  { %1407 = vsyncpa [#allocation4], 1 }

</bundles_post_ra>
